<compile_context>
chip_gen: v5e
topology: v5e:2x2
jax: 0.10.0
libtpu: 0.0.40
codegen_flags: <defaults>
</compile_context>

<pallas_src>
import functools

import numpy as np

import jax
import jax.numpy as jnp
from jax.experimental import pallas as pl
from jax.experimental.pallas import tpu as pltpu


def _l1_sum_kernel(c_pred_ref, c_real_ref, u_pred_ref, u_real_ref, out_ref,
                   *, c_scale, u_scale):
    """out = sum|c_pred - c_real| * c_scale + sum|u_pred - u_real| * u_scale.

    c_scale = 1/(B*Lc), u_scale = 1/(B*Lu) are baked-in Python constants, so
    this equals mean(|c_pred-c_real|) + mean(|u_pred-u_real|) exactly.
    """
    # In-kernel cast (VPU) keeps the HBM->VMEM transfer in the native dtype.
    c_diff = jnp.abs(c_pred_ref[...].astype(jnp.float32) - c_real_ref[...])
    u_diff = jnp.abs(u_pred_ref[...].astype(jnp.float32) - u_real_ref[...])
    out_ref[0, 0] = jnp.sum(c_diff) * c_scale + jnp.sum(u_diff) * u_scale


@jax.jit
def _device_loss(c_pred, u_pred, c_real, u_real):
    """Jitted device portion: one pallas_call, scalar result."""
    B, Lc = c_pred.shape
    _, Lu = u_pred.shape
    c_scale = 1.0 / float(B * Lc)
    u_scale = 1.0 / float(B * Lu)

    def full_block(arr):
        # Block == whole array -> exempt from the (8,128) divisibility rule.
        return pl.BlockSpec(arr.shape, lambda: (0, 0), memory_space=pltpu.VMEM)

    out = pl.pallas_call(
        functools.partial(_l1_sum_kernel, c_scale=c_scale, u_scale=u_scale),
        out_shape=jax.ShapeDtypeStruct((1, 1), jnp.float32),
        in_specs=[
            full_block(c_pred),   # (B, Lc), native dtype
            full_block(c_real),   # (B, Lc), f32
            full_block(u_pred),   # (B, Lu), native dtype
            full_block(u_real),   # (B, Lu), f32
        ],
        # Scalar result in SMEM (fall back to VMEM (1,1) if lowering rejects).
        out_specs=pl.BlockSpec((1, 1), lambda: (0, 0), memory_space=pltpu.SMEM),
    )(c_pred, c_real, u_pred, u_real)
    return out[0, 0]


def _pad_ragged(rows, width):
    """Host glue: pad ragged int rows with -1 to `width` (as the torch code)."""
    out = np.full((len(rows), width), -1.0, dtype=np.float32)
    for i, r in enumerate(rows):
        r = list(r)
        assert len(r) <= width, (
            f"ragged row of length {len(r)} exceeds prediction width {width}")
        out[i, :len(r)] = r
    return out


def parser_loss_codesum_drl(d_pred, c_pred, u_pred, d_real, c_real, u_real):
    """JAX wrapper mirroring ParserLossCodeSumDRL.forward."""
    del d_pred, d_real  # not used by the reference forward

    B, Lc = c_pred.shape
    Bu, Lu = u_pred.shape
    assert B == Bu, "batch mismatch between c_pred and u_pred"
    assert Lc > 0 and Lu > 0, "degenerate zero-width predictions"

    c_real_arr = jnp.asarray(_pad_ragged(c_real, Lc))
    u_real_arr = jnp.asarray(_pad_ragged(u_real, Lu))
    return _device_loss(c_pred, u_pred, c_real_arr, u_real_arr)


def _reference(c_pred, u_pred, c_real, u_real):
    """Pure-JAX reference of the same math for a correctness check."""
    c_len, u_len = c_pred.shape[1], u_pred.shape[1]
    c_real_p = jnp.asarray(
        [list(c) + [-1] * (c_len - len(c)) for c in c_real], dtype=jnp.float32
    )
    u_real_p = jnp.asarray(
        [list(u) + [-1] * (u_len - len(u)) for u in u_real], dtype=jnp.float32
    )
    cp = c_pred.astype(jnp.float32)
    up = u_pred.astype(jnp.float32)
    return jnp.mean(jnp.abs(cp - c_real_p)) + jnp.mean(jnp.abs(up - u_real_p))


if __name__ == "__main__":
    key = jax.random.PRNGKey(0)
    k1, k2, k3 = jax.random.split(key, 3)

    B, Lc, Lu = 2, 8, 8

    # Predictions (float) — what the probe model would output.
    d_pred = jax.random.normal(k1, (B, Lc), dtype=jnp.float32)  # unused, as in torch
    c_pred = jax.random.normal(k2, (B, Lc), dtype=jnp.float32)
    u_pred = jax.random.normal(k3, (B, Lu), dtype=jnp.float32)

    # Ragged ground-truth lists (ints), as the PyTorch forward expects.
    d_real = [[0] * Lc for _ in range(B)]  # unused
    c_real = [[1, 2, 3], [0, 1, 2, 3, 4]]
    u_real = [[2, 2], [1, 0, 1, 0, 1, 0]]

    loss = parser_loss_codesum_drl(d_pred, c_pred, u_pred, d_real, c_real, u_real)
    jax.block_until_ready(loss)

    ref = _reference(c_pred, u_pred, c_real, u_real)
    assert jnp.allclose(loss, ref, rtol=1e-6, atol=1e-6), (loss, ref)

    print("KERNEL_OK")
</pallas_src>

<mosaic_0001>
module attributes {stable_mosaic.version = 11 : i64} {
  func.func @_l1_sum_kernel(%arg0: memref<2x8xf32, #tpu.memory_space<vmem>>, %arg1: memref<2x8xf32, #tpu.memory_space<vmem>>, %arg2: memref<2x8xf32, #tpu.memory_space<vmem>>, %arg3: memref<2x8xf32, #tpu.memory_space<vmem>>, %arg4: memref<1x1xf32, #tpu.memory_space<smem>>) attributes {dimension_semantics = [], scalar_prefetch = 0 : i64, scratch_operands = 0 : i64, tpu.core_type = #tpu.core_type<tc>} {
    %c0 = arith.constant 0 : index
    %c0_0 = arith.constant 0 : index
    %0 = vector.load %arg0[%c0, %c0_0] : memref<2x8xf32, #tpu.memory_space<vmem>>, vector<2x8xf32>
    %c0_1 = arith.constant 0 : index
    %c0_2 = arith.constant 0 : index
    %1 = vector.load %arg1[%c0_1, %c0_2] : memref<2x8xf32, #tpu.memory_space<vmem>>, vector<2x8xf32>
    %2 = arith.subf %0, %1 : vector<2x8xf32>
    %3 = math.absf %2 : vector<2x8xf32>
    %c0_3 = arith.constant 0 : index
    %c0_4 = arith.constant 0 : index
    %4 = vector.load %arg2[%c0_3, %c0_4] : memref<2x8xf32, #tpu.memory_space<vmem>>, vector<2x8xf32>
    %c0_5 = arith.constant 0 : index
    %c0_6 = arith.constant 0 : index
    %5 = vector.load %arg3[%c0_5, %c0_6] : memref<2x8xf32, #tpu.memory_space<vmem>>, vector<2x8xf32>
    %6 = arith.subf %4, %5 : vector<2x8xf32>
    %7 = math.absf %6 : vector<2x8xf32>
    %8 = vector.shape_cast %3 : vector<2x8xf32> to vector<1x2x8xf32>
    %cst = arith.constant dense<0.000000e+00> : vector<1xf32>
    %9 = vector.multi_reduction <add>, %8, %cst [1, 2] : vector<1x2x8xf32> to vector<1xf32>
    %10 = vector.shape_cast %9 : vector<1xf32> to vector<1x1x1xf32>
    %11 = vector.extract %10[0, 0, 0] : f32 from vector<1x1x1xf32>
    %cst_7 = arith.constant 6.250000e-02 : f32
    %12 = arith.mulf %11, %cst_7 : f32
    %13 = vector.shape_cast %7 : vector<2x8xf32> to vector<1x2x8xf32>
    %cst_8 = arith.constant dense<0.000000e+00> : vector<1xf32>
    %14 = vector.multi_reduction <add>, %13, %cst_8 [1, 2] : vector<1x2x8xf32> to vector<1xf32>
    %15 = vector.shape_cast %14 : vector<1xf32> to vector<1x1x1xf32>
    %16 = vector.extract %15[0, 0, 0] : f32 from vector<1x1x1xf32>
    %cst_9 = arith.constant 6.250000e-02 : f32
    %17 = arith.mulf %16, %cst_9 : f32
    %18 = arith.addf %12, %17 : f32
    %c0_10 = arith.constant 0 : index
    %c0_11 = arith.constant 0 : index
    %19 = memref.load %arg4[%c0_10, %c0_11] : memref<1x1xf32, #tpu.memory_space<smem>>
    memref.store %18, %arg4[%c0_10, %c0_11] : memref<1x1xf32, #tpu.memory_space<smem>>
    return
  }
}

</mosaic_0001>

<bundles_post_ra>
// kernel: _device_loss.1
= control target key start
LH: loop header
LB: loop body
LE: loop exit
PB: predicated region body
PF: predicated region fallthrough
CT: control target
= control target key end

     0   :  { %9 = vsyncpa [#allocation3], 0  ;;  %s252_s0 = inlined_call_operand.hbm [shape: f32[2,8], index: 0, kind: input, shape index: {}]   ;;  %s253_s1 = inlined_call_operand.hbm [shape: f32[2,8], index: 1, kind: input, shape index: {}]   ;;  %s254_s2 = inlined_call_operand.hbm [shape: f32[2,8], index: 2, kind: input, shape index: {}]   ;;  %s255_s3 = inlined_call_operand.vmem [shape: f32[2,8], index: 3, kind: input, shape index: {}]   ;;  %s256_s4 = inlined_call_operand.hbm [shape: f32[1,1], index: 4, kind: output, shape index: {}]  }
   0x1   :  { %10 = vsyncpa [#allocation6], 0  ;;  %s28_s17 = sshll.u32 %s253_s1, 4  ;;  %s29_s17 = int_to_ptr.hbm [resolvable:$true] %s28_s17 }
   0x2   :  { %11 = vsyncpa [#allocation4], 0  ;;  %s208_s18 = smov [#allocation5]   ;;  %s17_s22 = sshll.u32 %s252_s0, 4  ;;  %s18_s22 = int_to_ptr.hbm [resolvable:$true] %s17_s22 }
   0x3   :  { %s30_s19 = sshll.u32 %s208_s18, 4  ;;  %s209_s23 = smov [#allocation2]   ;;  %s31_s19 = int_to_ptr.vmem [resolvable:$true] %s30_s19 }
   0x4   :  { %33 = dma.hbm_to_vmem [thread:$0]  %s29_s17, 32, %s31_s19, [#allocation6]  }
   0x5   :  { %s19_s24 = sshll.u32 %s209_s23, 4  ;;  %s39_s27 = sshll.u32 %s254_s2, 4  ;;  %s20_s24 = int_to_ptr.vmem [resolvable:$true] %s19_s24  ;;  %s40_s27 = int_to_ptr.hbm [resolvable:$true] %s39_s27 }
   0x6   :  { %22 = dma.hbm_to_vmem [thread:$0]  %s18_s22, 32, %s20_s24, [#allocation3]  }
   0x7   :  { %s210_s1 = smov [#allocation7]  }
   0x8   :  { %s41_s28 = sshll.u32 %s210_s1, 4  ;;  %s42_s28 = int_to_ptr.vmem [resolvable:$true] %s41_s28 }
   0x9   :  { %44 = dma.hbm_to_vmem [thread:$0]  %s40_s27, 32, %s42_s28, [#allocation6]  }
   0xa   :  { %202 = dma.done.wait [#allocation3], 32  }
   0xb   :  { %203 = vsyncadd [#allocation3], 4294967264 }
   0xc   :  { %204 = dma.done.wait [#allocation6], 64  }
   0xd   :  { %205 = vsyncadd [#allocation6], 4294967232  ;;  %v59_v0 = vld [vmem:[#allocation2] sm:$0x3]  ;;  %v60_v1 = vld [vmem:[#allocation5] sm:$0x3] }
   0xe   :  { %v63_v2 = vld [vmem:[#allocation7] sm:$0x3]  ;;  %v61_v3 = vsub.f32 %v59_v0, %v60_v1  ;;  %v64_v4 = vld [vmem:[%s255_s3] sm:$0x3]  ;;  %vm67_vm0 = vcmask 58368   ;;  %s98_s5 = sshll.u32 %s256_s4, 4  ;;  %s99_s5 = int_to_ptr.hbm [resolvable:$true] %s98_s5 }
   0xf   :  { %v65_v6 = vsub.f32 %v63_v2, %v64_v4  ;;  %s211_s10 = smov [#allocation8]  }
  0x10   :  { %v62_v5 = vand.u32 2147483647, %v61_v3 }
  0x11   :  { %v66_v8 = vand.u32 2147483647, %v65_v6 }
  0x12   :  { %v68_v7 = vsel %vm67_vm0, %v62_v5, 0.0 }
  0x13   :  { %69 = vadd.xlane.f32.xlu0 %v68_v7  ;;  %v79_v9 = vsel %vm67_vm0, %v66_v8, 0.0 }
  0x1b   :  { %80 = vadd.xlane.f32.xlu0 %v79_v9 }
  0x86   :  { %v70_v10 = vpop.xlane.xlu0 %69 }
  0x87   :  { %v71_v11 = vrot.slane %v70_v10, 4 }
  0x89   :  { %v72_v12 = vadd.f32 %v71_v11, %v70_v10 }
  0x8b   :  { %v73_v13 = vrot.slane %v72_v12, 2 }
  0x8d   :  { %v74_v14 = vadd.f32 %v73_v13, %v72_v12 }
  0x8e   :  { %v81_v15 = vpop.xlane.xlu0 %80 }
  0x8f   :  { %v82_v16 = vrot.slane %v81_v15, 4  ;;  %v75_v17 = vrot.slane %v74_v14, 1 }
  0x91   :  { %v83_v18 = vadd.f32 %v82_v16, %v81_v15  ;;  %v76_v19 = vadd.f32 %v75_v17, %v74_v14 }
  0x93   :  { %v84_v20 = vrot.slane %v83_v18, 2  ;;  %110 = vpush %v76_v19 }
  0x95   :  { %v85_v21 = vadd.f32 %v84_v20, %v83_v18 }
  0x97   :  { %v86_v22 = vrot.slane %v85_v21, 1 }
  0x99   :  { %v87_v23 = vadd.f32 %v86_v22, %v85_v21 }
  0x9b   :  { %112 = vpush %v87_v23 }
  0xc4   :  { %s111_s2 = spop %110 }
  0xc5   :  { %s78_s6 = smul.f32 0.0625, %s111_s2 }
  0xcc   :  { %s113_s7 = spop %112 }
  0xcd   :  { %s89_s8 = smul.f32 0.0625, %s113_s7 }
  0xcf   :  { %s90_s9 = sadd.f32 %s89_s8, %s78_s6 }
  0xd1   :  { %92 = sst [smem:[#allocation8]] %s90_s9 }
  0xd2   :  { %101 = dma.smem_to_hbm %s211_s10, 16, %s99_s5, [#allocation4]  }
  0xd3   :  { %206 = dma.done.wait [#allocation4], 16  }
  0xd4   :  { %207 = vsyncadd [#allocation4], 4294967280 }
  0xd5   :  { %106 = sfence }
  0xd6   :  { %107 = vsyncpa [#allocation3], 1 }
  0xd7   :  { %108 = vsyncpa [#allocation6], 1 }
  0xd8   :  { %109 = vsyncpa [#allocation4], 1 }

</bundles_post_ra>
